<compile_context>
chip_gen: v5e
topology: v5e:2x2
jax: 0.10.0
libtpu: 0.0.40
codegen_flags: <defaults>
</compile_context>

<pallas_src>
import functools

import jax
import jax.numpy as jnp
from jax import lax
from jax.experimental import pallas as pl
from jax.experimental.pallas import tpu as pltpu


# ------------------------- Pallas kernel -------------------------

def _fused_kernel(p_ref, w_ref, c_ref, o_ref, *, eps: float):
    # p_ref: (1, KKC+1, HW_pad)  im2col patches for this sample, last row = valid-lane
    #                            mask (1.0 on the 196 real columns, 0.0 on the pad)
    # w_ref: (Cout, KKC+1)       flattened conv weights with bias as the last column
    # c_ref: (Cout, Cout+2)      [:, :Cout] = same-group matrix / (cpg*HW)
    #                            [:, Cout]  = gamma,  [:, Cout+1] = beta
    # o_ref: (1, 1, HW_pad)      logsumexp over channels (padded lanes are garbage,
    #                            sliced off in the wrapper)
    cout = c_ref.shape[0]
    consts = c_ref[...]                              # (Cout, Cout+2)
    sg_scaled = consts[:, :cout]                     # (Cout, Cout)
    gamma = consts[:, cout:cout + 1]                 # (Cout, 1)
    beta = consts[:, cout + 1:cout + 2]              # (Cout, 1)

    # Convolution (+bias) as one MXU matmul; padded lanes of `conv` are exactly 0.
    conv = jnp.dot(w_ref[...], p_ref[0],
                   preferred_element_type=jnp.float32)          # (Cout, HW_pad)

    # GroupNorm statistics: lane-axis reductions to per-channel sums, then one tiny
    # dot per quantity to produce the per-channel group mean / E[x^2].
    csum = jnp.sum(conv, axis=-1, keepdims=True)                # (Cout, 1)
    csumsq = jnp.sum(conv * conv, axis=-1, keepdims=True)       # (Cout, 1)
    mean_c = jnp.dot(sg_scaled, csum,
                     preferred_element_type=jnp.float32)        # (Cout, 1)
    meansq_c = jnp.dot(sg_scaled, csumsq,
                       preferred_element_type=jnp.float32)      # (Cout, 1)
    var_c = meansq_c - mean_c * mean_c                          # biased variance

    x_norm = (conv - mean_c) * lax.rsqrt(var_c + eps) * gamma + beta

    x_tanh = jnp.tanh(x_norm)
    # Hardswish on tanh output: t in [-1,1]  =>  relu6(t+3) == t+3.
    x_hs = x_tanh * (x_tanh + 3.0) * (1.0 / 6.0)

    x_res = conv + x_hs                                         # (Cout, HW_pad)

    # LogSumExp over channels (sublane reduction).
    m = jnp.max(x_res, axis=0, keepdims=True)                   # (1, HW_pad)
    lse = m + jnp.log(jnp.sum(jnp.exp(x_res - m), axis=0, keepdims=True))

    o_ref[0] = lse


# ------------------------- Wrapper -------------------------

def fused_forward(x, w, b, gamma, beta, *, groups=8, eps=1e-5):
    """x: (N, Cin, H, W), w: (Cout, Cin, K, K), b/gamma/beta: (Cout,)"""
    n, cin, h, wdt = x.shape
    cout, _, k, _ = w.shape
    hout, wout = h - k + 1, wdt - k + 1
    hw = hout * wout
    hw_pad = pl.cdiv(hw, 128) * 128          # lane-dense padded spatial extent
    kkc = k * k * cin
    cpg = cout // groups

    # --- glue: im2col + parameter packing (plain JAX, outside the kernel) ---
    patch_list = []
    for kh in range(k):
        for kw in range(k):
            patch_list.append(x[:, :, kh:kh + hout, kw:kw + wout])  # (N,Cin,Hout,Wout)
    patches = jnp.concatenate(patch_list, axis=1).reshape(n, kkc, hw)
    patches = patches.astype(jnp.float32)
    pad = hw_pad - hw
    patches = jnp.pad(patches, ((0, 0), (0, 0), (0, pad)))          # zero-pad lanes
    ones_row = jnp.pad(jnp.ones((n, 1, hw), jnp.float32),
                       ((0, 0), (0, 0), (0, pad)))                  # bias/mask row
    patches_aug = jnp.concatenate([patches, ones_row], axis=1)      # (N, KKC+1, HW_pad)

    # weights flattened in (kh, kw, ci) order to match patch concat order; bias folded in
    w_flat = jnp.transpose(w, (0, 2, 3, 1)).reshape(cout, kkc).astype(jnp.float32)
    w_aug = jnp.concatenate([w_flat, b.reshape(cout, 1).astype(jnp.float32)], axis=1)

    # packed constants: pre-scaled same-group matrix, gamma, beta
    cidx = jnp.arange(cout)
    same_group = (cidx[:, None] // cpg == cidx[None, :] // cpg).astype(jnp.float32)
    sg_scaled = same_group * (1.0 / float(cpg * hw))
    consts = jnp.concatenate(
        [sg_scaled,
         gamma.reshape(cout, 1).astype(jnp.float32),
         beta.reshape(cout, 1).astype(jnp.float32)], axis=1)        # (Cout, Cout+2)

    kernel = functools.partial(_fused_kernel, eps=eps)

    out = pl.pallas_call(
        kernel,
        out_shape=jax.ShapeDtypeStruct((n, 1, hw_pad), jnp.float32),
        grid=(n,),
        in_specs=[
            pl.BlockSpec((1, kkc + 1, hw_pad), lambda i: (i, 0, 0)),
            pl.BlockSpec((cout, kkc + 1), lambda i: (0, 0)),
            pl.BlockSpec((cout, cout + 2), lambda i: (0, 0)),
        ],
        out_specs=pl.BlockSpec((1, 1, hw_pad), lambda i: (i, 0, 0)),
        compiler_params=pltpu.CompilerParams(
            dimension_semantics=("parallel",)),
    )(patches_aug, w_aug, consts)

    return out[:, :, :hw].reshape(n, 1, hout, wout)


# ------------------------- Pure-JAX reference -------------------------

def reference_forward(x, w, b, gamma, beta, *, groups=8, eps=1e-5):
    conv = lax.conv_general_dilated(
        x, w, window_strides=(1, 1), padding="VALID",
        dimension_numbers=("NCHW", "OIHW", "NCHW"))
    conv = conv + b[None, :, None, None]
    n, c, h, wdt = conv.shape
    cpg = c // groups
    xg = conv.reshape(n, groups, cpg, h, wdt)
    mean = jnp.mean(xg, axis=(2, 3, 4), keepdims=True)
    var = jnp.mean((xg - mean) ** 2, axis=(2, 3, 4), keepdims=True)
    xn = ((xg - mean) * lax.rsqrt(var + eps)).reshape(n, c, h, wdt)
    xn = xn * gamma[None, :, None, None] + beta[None, :, None, None]
    xt = jnp.tanh(xn)
    hs = xt * jnp.clip(xt + 3.0, 0.0, 6.0) / 6.0
    xres = conv + hs
    return jax.scipy.special.logsumexp(xres, axis=1, keepdims=True)


# ------------------------- Main -------------------------

if __name__ == "__main__":
    batch, in_channels, out_channels, kernel_size, groups = 2, 3, 16, 3, 8
    H = W = 16

    key = jax.random.PRNGKey(0)
    kx, kw, kb, kg, kbe = jax.random.split(key, 5)

    x = jax.random.normal(kx, (batch, in_channels, H, W), dtype=jnp.float32)
    fan_in = in_channels * kernel_size * kernel_size
    w = jax.random.uniform(kw, (out_channels, in_channels, kernel_size, kernel_size),
                           dtype=jnp.float32, minval=-1.0, maxval=1.0) / jnp.sqrt(fan_in)
    b = jax.random.uniform(kb, (out_channels,), dtype=jnp.float32,
                           minval=-1.0, maxval=1.0) / jnp.sqrt(fan_in)
    gamma = 1.0 + 0.1 * jax.random.normal(kg, (out_channels,), dtype=jnp.float32)
    beta = 0.1 * jax.random.normal(kbe, (out_channels,), dtype=jnp.float32)

    out = fused_forward(x, w, b, gamma, beta, groups=groups, eps=1e-5)
    out = jax.block_until_ready(out)

    ref = reference_forward(x, w, b, gamma, beta, groups=groups, eps=1e-5)
    assert out.shape == (batch, 1, H - kernel_size + 1, W - kernel_size + 1), out.shape
    assert jnp.allclose(out, ref, rtol=1e-4, atol=1e-4), \
        f"max abs err = {jnp.max(jnp.abs(out - ref))}"

    print("KERNEL_OK")
</pallas_src>

<mosaic_0001>
module attributes {stable_mosaic.version = 11 : i64} {
  func.func @_fused_kernel(%arg0: i32, %arg1: memref<1x28x256xf32, #tpu.memory_space<vmem>>, %arg2: memref<16x28xf32, #tpu.memory_space<vmem>>, %arg3: memref<16x18xf32, #tpu.memory_space<vmem>>, %arg4: memref<1x1x256xf32, #tpu.memory_space<vmem>>) attributes {dimension_semantics = [#tpu.dimension_semantics<parallel>], iteration_bounds = array<i64: 2>, scalar_prefetch = 0 : i64, scratch_operands = 0 : i64, tpu.core_type = #tpu.core_type<tc>, window_params = [{transform_indices = @transform_0, window_bounds = array<i64: 1, 28, 256>}, {pipeline_mode = #tpu.pipeline_mode<synchronous>, transform_indices = @transform_1, window_bounds = array<i64: 16, 28>}, {pipeline_mode = #tpu.pipeline_mode<synchronous>, transform_indices = @transform_2, window_bounds = array<i64: 16, 18>}, {transform_indices = @transform_3, window_bounds = array<i64: 1, 1, 256>}]} {
    %c0 = arith.constant 0 : index
    %c0_0 = arith.constant 0 : index
    %0 = vector.load %arg3[%c0, %c0_0] : memref<16x18xf32, #tpu.memory_space<vmem>>, vector<16x18xf32>
    %1 = vector.extract_strided_slice %0 {offsets = [0, 0], sizes = [16, 16], strides = [1, 1]} : vector<16x18xf32> to vector<16x16xf32>
    %2 = vector.extract_strided_slice %0 {offsets = [0, 16], sizes = [16, 1], strides = [1, 1]} : vector<16x18xf32> to vector<16x1xf32>
    %3 = vector.extract_strided_slice %0 {offsets = [0, 17], sizes = [16, 1], strides = [1, 1]} : vector<16x18xf32> to vector<16x1xf32>
    %c0_1 = arith.constant 0 : index
    %c0_2 = arith.constant 0 : index
    %4 = vector.load %arg2[%c0_1, %c0_2] : memref<16x28xf32, #tpu.memory_space<vmem>>, vector<16x28xf32>
    %c0_3 = arith.constant 0 : index
    %c0_4 = arith.constant 0 : index
    %c0_5 = arith.constant 0 : index
    %5 = vector.load %arg1[%c0_3, %c0_4, %c0_5] : memref<1x28x256xf32, #tpu.memory_space<vmem>>, vector<1x28x256xf32>
    %6 = vector.shape_cast %5 : vector<1x28x256xf32> to vector<28x256xf32>
    %cst = arith.constant dense<0.000000e+00> : vector<16x256xf32>
    %7 = tpu.matmul %4, %6, %cst {dimension_numbers = #tpu.dot_dimension_numbers<[1], [0], [0], [1], [0, 0, 1, 1], [], []>} : vector<16x28xf32>, vector<28x256xf32>, vector<16x256xf32> -> vector<16x256xf32>
    %cst_6 = arith.constant dense<0.000000e+00> : vector<16xf32>
    %8 = vector.multi_reduction <add>, %7, %cst_6 [1] : vector<16x256xf32> to vector<16xf32>
    %9 = vector.shape_cast %8 : vector<16xf32> to vector<16x1xf32>
    %10 = arith.mulf %7, %7 : vector<16x256xf32>
    %cst_7 = arith.constant dense<0.000000e+00> : vector<16xf32>
    %11 = vector.multi_reduction <add>, %10, %cst_7 [1] : vector<16x256xf32> to vector<16xf32>
    %12 = vector.shape_cast %11 : vector<16xf32> to vector<16x1xf32>
    %cst_8 = arith.constant dense<0.000000e+00> : vector<16x1xf32>
    %13 = tpu.matmul %1, %9, %cst_8 {dimension_numbers = #tpu.dot_dimension_numbers<[1], [0], [0], [1], [0, 0, 1, 1], [], []>} : vector<16x16xf32>, vector<16x1xf32>, vector<16x1xf32> -> vector<16x1xf32>
    %cst_9 = arith.constant dense<0.000000e+00> : vector<16x1xf32>
    %14 = tpu.matmul %1, %12, %cst_9 {dimension_numbers = #tpu.dot_dimension_numbers<[1], [0], [0], [1], [0, 0, 1, 1], [], []>} : vector<16x16xf32>, vector<16x1xf32>, vector<16x1xf32> -> vector<16x1xf32>
    %15 = arith.mulf %13, %13 : vector<16x1xf32>
    %16 = arith.subf %14, %15 : vector<16x1xf32>
    %17 = vector.broadcast %13 : vector<16x1xf32> to vector<16x256xf32>
    %18 = arith.subf %7, %17 : vector<16x256xf32>
    %cst_10 = arith.constant 9.99999974E-6 : f32
    %19 = vector.broadcast %cst_10 : f32 to vector<16x1xf32>
    %20 = arith.addf %16, %19 : vector<16x1xf32>
    %21 = math.rsqrt %20 : vector<16x1xf32>
    %22 = vector.broadcast %21 : vector<16x1xf32> to vector<16x256xf32>
    %23 = arith.mulf %18, %22 : vector<16x256xf32>
    %24 = vector.broadcast %2 : vector<16x1xf32> to vector<16x256xf32>
    %25 = arith.mulf %23, %24 : vector<16x256xf32>
    %26 = vector.broadcast %3 : vector<16x1xf32> to vector<16x256xf32>
    %27 = arith.addf %25, %26 : vector<16x256xf32>
    %28 = math.tanh %27 : vector<16x256xf32>
    %cst_11 = arith.constant 3.000000e+00 : f32
    %29 = vector.broadcast %cst_11 : f32 to vector<16x256xf32>
    %30 = arith.addf %28, %29 : vector<16x256xf32>
    %31 = arith.mulf %28, %30 : vector<16x256xf32>
    %cst_12 = arith.constant 0.166666672 : f32
    %32 = vector.broadcast %cst_12 : f32 to vector<16x256xf32>
    %33 = arith.mulf %31, %32 : vector<16x256xf32>
    %34 = arith.addf %7, %33 : vector<16x256xf32>
    %cst_13 = arith.constant dense<0xFF800000> : vector<256xf32>
    %35 = vector.multi_reduction <maximumf>, %34, %cst_13 [0] : vector<16x256xf32> to vector<256xf32>
    %36 = vector.shape_cast %35 : vector<256xf32> to vector<1x256xf32>
    %37 = vector.broadcast %36 : vector<1x256xf32> to vector<16x256xf32>
    %38 = arith.subf %34, %37 : vector<16x256xf32>
    %39 = math.exp %38 : vector<16x256xf32>
    %cst_14 = arith.constant dense<0.000000e+00> : vector<256xf32>
    %40 = vector.multi_reduction <add>, %39, %cst_14 [0] : vector<16x256xf32> to vector<256xf32>
    %41 = vector.shape_cast %40 : vector<256xf32> to vector<1x256xf32>
    %42 = math.log %41 : vector<1x256xf32>
    %43 = arith.addf %36, %42 : vector<1x256xf32>
    %c0_15 = arith.constant 0 : index
    %c0_16 = arith.constant 0 : index
    %c0_17 = arith.constant 0 : index
    %44 = vector.load %arg4[%c0_15, %c0_16, %c0_17] : memref<1x1x256xf32, #tpu.memory_space<vmem>>, vector<1x1x256xf32>
    %45 = vector.shape_cast %44 : vector<1x1x256xf32> to vector<1x256xf32>
    %46 = vector.shape_cast %43 : vector<1x256xf32> to vector<1x1x256xf32>
    tpu.vector_store %arg4[%c0_15, %c0_16, %c0_17], %46 {strides = array<i32>} : memref<1x1x256xf32, #tpu.memory_space<vmem>>, vector<1x1x256xf32>,
    return
  }
  func.func @transform_0(%arg0: i32) -> (i32, i32, i32) {
    %c0_i32 = arith.constant 0 : i32
    %c0_i32_0 = arith.constant 0 : i32
    %c0_i32_1 = arith.constant 0 : i32
    return %arg0, %c0_i32, %c0_i32_0 : i32, i32, i32
  }
  func.func @transform_1(%arg0: i32) -> (i32, i32) {
    %c0_i32 = arith.constant 0 : i32
    %c0_i32_0 = arith.constant 0 : i32
    %c0_i32_1 = arith.constant 0 : i32
    return %c0_i32, %c0_i32_0 : i32, i32
  }
  func.func @transform_2(%arg0: i32) -> (i32, i32) {
    %c0_i32 = arith.constant 0 : i32
    %c0_i32_0 = arith.constant 0 : i32
    %c0_i32_1 = arith.constant 0 : i32
    return %c0_i32, %c0_i32_0 : i32, i32
  }
  func.func @transform_3(%arg0: i32) -> (i32, i32, i32) {
    %c0_i32 = arith.constant 0 : i32
    %c0_i32_0 = arith.constant 0 : i32
    %c0_i32_1 = arith.constant 0 : i32
    return %arg0, %c0_i32, %c0_i32_0 : i32, i32, i32
  }
}

</mosaic_0001>

<bundles_post_ra>
// kernel: tpu_custom_call.1
= control target key start
LH: loop header
LB: loop body
LE: loop exit
PB: predicated region body
PF: predicated region fallthrough
CT: control target
= control target key end

     0   :  { %8 = vsyncpa [#allocation3], 0  ;;  %s846_s0 = inlined_call_operand.vmem [shape: f32[2,28,256], index: 0, kind: input, shape index: {}]   ;;  %s847_s1 = inlined_call_operand.vmem [shape: f32[16,28], index: 1, kind: input, shape index: {}]   ;;  %s848_s2 = inlined_call_operand.vmem [shape: f32[16,18], index: 2, kind: input, shape index: {}]   ;;  %s849_s3 = inlined_call_operand.hbm [shape: f32[2,1,256], index: 3, kind: output, shape index: {}]  }
   0x1   :  { %10 = vsyncpa [#allocation3 + $0x1], 0  ;;  %s721_s12 = smov 0   ;;  %s723_s13 = smov 0  }
   0x2   :  { %s725_s14 = smov 0   ;;  %s727_s15 = smov 0  }
   0x3 LB: > { %s742_s16 = sadd.s32 4294967295, %s696_s15   ;;  %s540_s17 = sadd.s32 4294967294, %s696_s15   ;;  %s696_s15 = sphi %s727_s15, %s855_s15   ;;  %s692_s14 = sphi %s725_s14, %s854_s14   ;;  %s688_s13 = sphi %s723_s13, %s853_s13   ;;  %s684_s12 = sphi %s721_s12, %s852_s12  }
   0x4   : > { %s746_s18 = sadd.s32 1, %s696_s15   ;;  %s91_s19 = sadd.s32 1, %s692_s14 }
   0x5   : > { %s88_s20 = ssub.s32 %s696_s15, %s746_s18  ;;  %p101_p0 = scmp.ne.s32.totalorder %s692_s14, %s688_s13 }
   0x6   : > { %p89_p1 = scmp.eq.s32.totalorder %s88_s20, 0  ;;  %p102_p2 = scmp.eq.s32.totalorder %s742_s16, 1 }
   0x7   : > { %p107_p3 = scmp.ne.s32.totalorder %s688_s13, %s684_s12  ;;  %p108_p4 = scmp.eq.s32.totalorder %s540_s17, 1 }
   0x8   : > { %s757_s21 = scalar_select %p89_p1, %s692_s14, %s91_s19  }
   0x9   : > { %p759_p5 = por %p102_p2, %p101_p0  ;;  %p763_p6 = por %p108_p4, %p107_p3 }
   0xa   : > { %p543_p7 = scmp.ge.s32.totalorder %s696_s15, 1  ;;  %p140_p8 = scmp.lt.s32.totalorder %s696_s15, 3 }
   0xc   : > { %p141_p9 = pnand %p543_p7, %p140_p8 }
   0xd   : > { %p164_p10 = scmp.lt.s32.totalorder (!%p141_p9), %s742_s16, 1  ;;  %s161_s10 = sand.u32 (!%p141_p9), 1, %s688_s13  }
   0xe   : > { %144 = sbr.rel (%p141_p9) target bundleno = 651 (0x28b), region = 32  ;;  %s544_s11 = sshll.u32 (!%p141_p9), %s161_s10, 1 }
   0xf   : > { %s558_s17 = sshll.u32 (!%p141_p9), %s742_s16, 1  ;;  %s654_s5 = scalar_lea.hbm (!%p141_p9), %s849_s3, 4 }
  0x13   : > { %s165_s24 = scalar_select %p164_p10, %s742_s16, 1  ;;  %vm188_vm0 = vcmask 1043456   ;;  %v171_v8 = vld [vmem:[%s847_s1] sm:$0xff]  ;;  %vm181_vm1 = vcmask 228352   ;;  %v172_v9 = vld [vmem:[%s847_s1 + $0x8] sm:$0xff]  ;;  %v698_v22 = vmov 0  }
  0x14   : > { %604 = vset.pattern.permute.xlu2 %v698_v22  ;;  %605 = vset.pattern.permute.xlu0 %v698_v22  ;;  %v169_v25 = vld [vmem:[%s848_s2] sm:$0xff]  ;;  %vm257_vm2 = vcmask 130048   ;;  %v170_v28 = vld [vmem:[%s848_s2 + $0x8] sm:$0xff]  ;;  %v699_v42 = vmov 16   ;;  %v700_v54 = vmov 17   ;;  %vm457_vm9 = vcmask 1040384  }
  0x15   : > { %s561_s25 = sshll.u32 %s165_s24, 6  ;;  %606 = vset.pattern.permute.xlu1 %v698_v22  ;;  %s476_s24 = scalar_lea.hbm %s849_s3, %s558_s17 }
  0x16   : > { %s168_s28 = scalar_lea.vmem %s846_s0, %s561_s25  ;;  %s163_s25 = scalar_lea.vmem [#allocation2], %s544_s11 }
  0x17   : > { %v179_v0 = vld [vmem:[%s168_s28 + $0x30] sm:$0xf]  ;;  %v180_v1 = vld [vmem:[%s168_s28 + $0x38] sm:$0xf]  ;;  %v177_v2 = vld [vmem:[%s168_s28 + $0x20] sm:$0xff]  ;;  %s478_s26 = sshll.u32 %s163_s25, 4  ;;  %s479_s26 = int_to_ptr.vmem [resolvable:$true] %s478_s26 }
  0x18   : > { %547 = vmatpush.msk.msra.mxu0 %vm188_vm0, %v179_v0  ;;  %550 = vmatpush.msk.msra.mxu1 %vm188_vm0, %v180_v1  ;;  %v178_v3 = vld [vmem:[%s168_s28 + $0x28] sm:$0xff]  ;;  %v175_v4 = vld [vmem:[%s168_s28 + $0x10] sm:$0xff]  ;;  %v176_v5 = vld [vmem:[%s168_s28 + $0x18] sm:$0xff]  ;;  %s480_s27 = sshll.u32 %s476_s24, 4  ;;  %s466_s16 = scalar_lea.sflag [#allocation3], %s161_s10  ;;  %s481_s27 = int_to_ptr.hbm [resolvable:$true] %s480_s27 }
  0x19   : > { %v173_v6 = vld [vmem:[%s168_s28] sm:$0xff]  ;;  %v174_v7 = vld [vmem:[%s168_s28 + $0x8] sm:$0xff]  ;;  %s648_s28 = sshra.s32 %s481_s27, 4  ;;  %s649_s28 = int_to_ptr.hbm [resolvable:$true] %s648_s28 }
  0x1a   : > { %208 = vmatpush.msra.mxu0 %v177_v2  ;;  %231 = vmatpush.msra.mxu1 %v178_v3  ;;  %s650_s29 = scalar_lea.hbm %s649_s28, 2  ;;  %p655_p0 = scmp.lt.s32.totalorder %s649_s28, %s849_s3 }
  0x1b   : > { %p651_p11 = scmp.ne.s32.totalorder %s649_s28, %s650_s29  ;;  %p656_p1 = scmp.lt.s32.totalorder %s654_s5, %s650_s29 }
  0x1c   : > { %209 = vmatpush.msra.mxu0 %v175_v4  ;;  %232 = vmatpush.msra.mxu1 %v176_v5 }
  0x1d   : > { %p652_p12 = pnand %p651_p11, %p759_p5  ;;  %p657_p2 = por %p656_p1, %p655_p0 }
  0x1e   : > { %210 = vmatpush.msra.mxu0 %v173_v6  ;;  %233 = vmatpush.msra.mxu1 %v174_v7 }
  0x1f   : > { %548 = vmatmul.msk.f32.vlgmr.msra.gmra.mxu0 %vm181_vm1, %v171_v8  ;;  %551 = vmatmul.msk.f32.vlgmr.msra.gmra.mxu1 %vm181_vm1, %v171_v8  ;;  %p653_p13 = pneg %p652_p12 }
  0x21   : > { %p658_p3 = pnand %p657_p2, %p653_p13 }
  0x27   : > { %549 = vmatmul.msk.f32.gmra.mxu0 %vm181_vm1, %v172_v9  ;;  %552 = vmatmul.msk.f32.gmra.mxu1 %vm181_vm1, %v172_v9 }
  0x9c   : > { %v780_v10 = vpop.f32.mrf.mxu0  ;;  %v782_v11 = vpop.f32.mrf.mxu1 }
  0x9d   : > { %v247_v18 = vmul.f32 %v780_v10, %v780_v10  ;;  %v248_v19 = vmul.f32 %v782_v11, %v782_v11  ;;  %v241_v20 = vadd.f32 %v782_v11, %v780_v10 }
  0x9f   : > { %v251_v21 = vadd.f32 %v248_v19, %v247_v18 }
  0xa4   : > { %v784_v12 = vpop.f32.mrf.mxu0  ;;  %v786_v13 = vpop.f32.mrf.mxu1 }
  0xa5   : > { %v244_v14 = vadd.f32 %v786_v13, %v784_v12  ;;  %v249_v15 = vmul.f32 %v784_v12, %v784_v12  ;;  %v250_v16 = vmul.f32 %v786_v13, %v786_v13 }
  0xa7   : > { %245 = vadd.xlane.f32.xlu0 %v244_v14  ;;  %v254_v17 = vadd.f32 %v250_v16, %v249_v15 }
  0xa9   : > { %255 = vadd.xlane.f32.xlu1 %v254_v17 }
  0xaf   : > { %242 = vadd.xlane.f32.xlu0 %v241_v20 }
  0xb1   : > { %252 = vadd.xlane.f32.xlu1 %v251_v21 }
 0x11a   : > { %v246_v23 = vpop.xlane.xlu0 %245 }
 0x11b   : > { %278 = vmatpush.msra.mxu2 %v246_v23 }
 0x11c   : > { %v256_v24 = vpop.xlane.xlu1 %255 }
 0x11d   : > { %301 = vmatpush.msra.mxu3 %v256_v24 }
 0x122   : > { %v243_v26 = vpop.xlane.xlu0 %242 }
 0x123   : > { %279 = vmatpush.msra.mxu2 %v243_v26 }
 0x124   : > { %v253_v27 = vpop.xlane.xlu1 %252  ;;  %553 = vmatmul.msk.f32.vlgmr.msra.gmra.mxu2 %vm257_vm2, %v169_v25 }
 0x125   : > { %302 = vmatpush.msra.mxu3 %v253_v27 }
 0x126   : > { %555 = vmatmul.msk.f32.vlgmr.msra.gmra.mxu3 %vm257_vm2, %v169_v25 }
 0x12c   : > { %554 = vmatmul.msk.f32.gmra.mxu2 %vm257_vm2, %v170_v28 }
 0x12e   : > { %556 = vmatmul.msk.f32.gmra.mxu3 %vm257_vm2, %v170_v28 }
 0x1a7   : > { %v281_v29 = vpop.f32.mrf.mxu2 }
 0x1a8   : > { %v310_v30 = vmul.f32 %v281_v29, %v281_v29  ;;  %316 = vperm.xlu2 %604, %v281_v29  }
 0x1a9   : > { %v304_v31 = vpop.f32.mrf.mxu3 }
 0x1aa   : > { %v312_v32 = vsub.f32 %v304_v31, %v310_v30 }
 0x1ac   : > { %v328_v33 = vadd.f32 1e-05, %v312_v32 }
 0x1ae   : > { %610 = vrsqrt.f32 %v328_v33  ;;  %vm336_vm4 = vweird.f32 %v328_v33 }
 0x1af   : > { %v284_v34 = vpop.f32.mrf.mxu2 }
 0x1b0   : > { %v311_v35 = vmul.f32 %v284_v34, %v284_v34  ;;  %321 = vperm.xlu2 %604, %v284_v34  }
 0x1b1   : > { %v307_v36 = vpop.f32.mrf.mxu3 }
 0x1b2   : > { %v313_v37 = vsub.f32 %v307_v36, %v311_v35 }
 0x1b4   : > { %v611_v38 = vpop.eup %610  ;;  %v329_v39 = vadd.f32 1e-05, %v313_v37 }
 0x1b5   : > { %v331_v40 = vmul.f32 %v611_v38, %v328_v33  ;;  %vm337_vm3 = vweird.f32 %v611_v38 }
 0x1b6   : > { %612 = vrsqrt.f32 %v329_v39  ;;  %vm338_vm5 = vmor %vm336_vm4, %vm337_vm3  ;;  %vm346_vm7 = vweird.f32 %v329_v39 }
 0x1b7   : > { %v332_v41 = vmul.f32 %v611_v38, %v331_v40 }
 0x1b8   : > { %607 = vset.pattern.permute.xlu2 %v699_v42 }
 0x1b9   : > { %v333_v43 = vmul.f32 0.5, %v332_v41  ;;  %365 = vperm.xlu2 %607, %v169_v25  }
 0x1bb   : > { %v334_v44 = vsub.f32 1.5, %v333_v43 }
 0x1bc   : > { %v613_v45 = vpop.eup %612 }
 0x1bd   : > { %v341_v46 = vmul.f32 %v613_v45, %v329_v39  ;;  %v335_v47 = vmul.f32 %v611_v38, %v334_v44  ;;  %vm347_vm6 = vweird.f32 %v613_v45 }
 0x1be   : > { %vm348_vm8 = vmor %vm346_vm7, %vm347_vm6 }
 0x1bf   : > { %v342_v48 = vmul.f32 %v613_v45, %v341_v46  ;;  %v339_v49 = vsel %vm338_vm5, %v611_v38, %v335_v47 }
 0x1c0   : > { %352 = vperm.xlu0 %605, %v339_v49  }
 0x1c1   : > { %v343_v50 = vmul.f32 0.5, %v342_v48  ;;  %369 = vperm.xlu2 %607, %v170_v28  }
 0x1c3   : > { %v344_v51 = vsub.f32 1.5, %v343_v50 }
 0x1c5   : > { %v345_v52 = vmul.f32 %v613_v45, %v344_v51 }
 0x1c7   : > { %v349_v53 = vsel %vm348_vm8, %v613_v45, %v345_v52 }
 0x1c8   : > { %357 = vperm.xlu1 %606, %v349_v53   ;;  %609 = vset.pattern.permute.xlu0 %v700_v54 }
 0x1c9   : > { %608 = vset.pattern.permute.xlu2 %v700_v54 }
 0x1ca   : > { %377 = vperm.xlu2 %608, %v169_v25  }
 0x1d2   : > { %381 = vperm.xlu2 %608, %v170_v28  }
 0x202   : > { %v317_v55 = vpop.permute.xlu2 %316 }
 0x203   : > { %v324_v59 = vsub.f32 %v780_v10, %v317_v55  ;;  %v325_v60 = vsub.f32 %v782_v11, %v317_v55 }
 0x20a   : > { %v322_v56 = vpop.permute.xlu2 %321 }
 0x20b   : > { %v326_v5 = vsub.f32 %v784_v12, %v322_v56  ;;  %v327_v6 = vsub.f32 %v786_v13, %v322_v56 }
 0x213   : > { %v366_v57 = vpop.permute.xlu2 %365 }
 0x21b   : > { %v370_v58 = vpop.permute.xlu2 %369 }
 0x224   : > { %v378_v0 = vpop.permute.xlu2 %377 }
 0x22c   : > { %v382_v16 = vpop.permute.xlu2 %381 }
 0x232   : > { %v353_v61 = vpop.permute.xlu0 %352 }
 0x233   : > { %v360_v62 = vmul.f32 %v353_v61, %v324_v59  ;;  %v361_v63 = vmul.f32 %v353_v61, %v325_v60 }
 0x235   : > { %v372_v1 = vmul.f32 %v366_v57, %v360_v62  ;;  %v373_v2 = vmul.f32 %v366_v57, %v361_v63 }
 0x237   : > { %v384_v3 = vadd.f32 %v378_v0, %v372_v1  ;;  %v385_v4 = vadd.f32 %v378_v0, %v373_v2 }
 0x239   : > { %614 = vtanh.f32 %v384_v3 }
 0x23a   : > { %616 = vtanh.f32 %v385_v4  ;;  %v358_v7 = vpop.permute.xlu1 %357 }
 0x23b   : > { %v362_v8 = vmul.f32 %v358_v7, %v326_v5  ;;  %v363_v9 = vmul.f32 %v358_v7, %v327_v6 }
 0x23d   : > { %v374_v14 = vmul.f32 %v370_v58, %v362_v8  ;;  %v375_v15 = vmul.f32 %v370_v58, %v363_v9 }
 0x23f   : > { %v615_v17 = vpop.eup %614  ;;  %v386_v18 = vadd.f32 %v382_v16, %v374_v14  ;;  %v387_v19 = vadd.f32 %v382_v16, %v375_v15 }
 0x240   : > { %v617_v20 = vpop.eup %616  ;;  %v392_v21 = vadd.f32 3.0, %v615_v17 }
 0x241   : > { %618 = vtanh.f32 %v386_v18  ;;  %v393_v22 = vadd.f32 3.0, %v617_v20 }
 0x242   : > { %620 = vtanh.f32 %v387_v19  ;;  %v396_v23 = vmul.f32 %v615_v17, %v392_v21  ;;  %v460_v19 = vlaneseq }
 0x243   : > { %v397_v25 = vmul.f32 %v617_v20, %v393_v22 }
 0x244   : > { %v400_v29 = vmul.f32 0.16666667, %v396_v23  ;;  %vm462_vm10 = vcmp.lt.s32.totalorder %v460_v19, 256 }
 0x245   : > { %v401_v31 = vmul.f32 0.16666667, %v397_v25 }
 0x246   : > { %v404_v35 = vadd.f32 %v400_v29, %v780_v10 }
 0x247   : > { %v619_v24 = vpop.eup %618  ;;  %v405_v37 = vadd.f32 %v401_v31, %v782_v11 }
 0x248   : > { %v621_v26 = vpop.eup %620  ;;  %v394_v27 = vadd.f32 3.0, %v619_v24 }
 0x249   : > { %v395_v28 = vadd.f32 3.0, %v621_v26 }
 0x24a   : > { %v398_v30 = vmul.f32 %v619_v24, %v394_v27 }
 0x24b   : > { %v399_v32 = vmul.f32 %v621_v26, %v395_v28 }
 0x24c   : > { %v402_v33 = vmul.f32 0.16666667, %v398_v30 }
 0x24d   : > { %v403_v34 = vmul.f32 0.16666667, %v399_v32 }
 0x24e   : > { %v406_v36 = vadd.f32 %v402_v33, %v784_v12 }
 0x24f   : > { %v407_v38 = vadd.f32 %v403_v34, %v786_v13 }
 0x250   : > { %v408_v39 = vmax.f32 %v404_v35, %v406_v36 }
 0x251   : > { %v415_v40 = vmax.f32 %v405_v37, %v407_v38 }
 0x252   : > { %v409_v41 = vrot.slane %v408_v39, 4 }
 0x253   : > { %v416_v42 = vrot.slane %v415_v40, 4 }
 0x254   : > { %v410_v43 = vmax.f32 %v408_v39, %v409_v41 }
 0x255   : > { %v417_v44 = vmax.f32 %v415_v40, %v416_v42 }
 0x256   : > { %v411_v45 = vrot.slane %v410_v43, 2 }
 0x257   : > { %v418_v46 = vrot.slane %v417_v44, 2 }
 0x258   : > { %v412_v47 = vmax.f32 %v410_v43, %v411_v45 }
 0x259   : > { %v419_v48 = vmax.f32 %v417_v44, %v418_v46 }
 0x25a   : > { %v413_v49 = vrot.slane %v412_v47, 1 }
 0x25b   : > { %v420_v50 = vrot.slane %v419_v48, 1 }
 0x25c   : > { %v414_v51 = vmax.f32 %v412_v47, %v413_v49 }
 0x25d   : > { %v421_v10 = vmax.f32 %v419_v48, %v420_v50 }
 0x25e   : > { %v422_v52 = vsub.f32 %v404_v35, %v414_v51  ;;  %v424_v12 = vsub.f32 %v406_v36, %v414_v51 }
 0x25f   : > { %v423_v53 = vsub.f32 %v405_v37, %v421_v10  ;;  %v425_v11 = vsub.f32 %v407_v38, %v421_v10 }
 0x260   : > { %v426_v54 = vmul.f32 1.442695, %v422_v52  ;;  %v430_v13 = vmul.f32 1.442695, %v424_v12 }
 0x261   : > { %v428_v55 = vmul.f32 1.442695, %v423_v53  ;;  %v432_v56 = vmul.f32 1.442695, %v425_v11 }
 0x262   : > { %622 = vpow2.f32 %v426_v54 }
 0x263   : > { %624 = vpow2.f32 %v428_v55 }
 0x264   : > { %626 = vpow2.f32 %v430_v13 }
 0x265   : > { %628 = vpow2.f32 %v432_v56 }
 0x268   : > { %v623_v57 = vpop.eup %622 }
 0x269   : > { %v625_v58 = vpop.eup %624 }
 0x26a   : > { %v627_v59 = vpop.eup %626 }
 0x26b   : > { %v629_v60 = vpop.eup %628  ;;  %v434_v61 = vadd.f32 %v627_v59, %v623_v57 }
 0x26c   : > { %v441_v62 = vadd.f32 %v629_v60, %v625_v58 }
 0x26d   : > { %v435_v63 = vrot.slane %v434_v61, 4 }
 0x26e   : > { %v442_v0 = vrot.slane %v441_v62, 4 }
 0x26f   : > { %v436_v1 = vadd.f32 %v435_v63, %v434_v61 }
 0x270   : > { %v443_v2 = vadd.f32 %v442_v0, %v441_v62 }
 0x271   : > { %v437_v3 = vrot.slane %v436_v1, 2 }
 0x272   : > { %v444_v4 = vrot.slane %v443_v2, 2 }
 0x273   : > { %v438_v5 = vadd.f32 %v437_v3, %v436_v1 }
 0x274   : > { %v445_v6 = vadd.f32 %v444_v4, %v443_v2 }
 0x275   : > { %v439_v7 = vrot.slane %v438_v5, 1 }
 0x276   : > { %v446_v8 = vrot.slane %v445_v6, 1 }
 0x277   : > { %v440_v9 = vadd.f32 %v439_v7, %v438_v5 }
 0x278   : > { %v447_v14 = vadd.f32 %v446_v8, %v445_v6 }
 0x279   : > { %630 = vlog2.f32 %v440_v9 }
 0x27a   : > { %632 = vlog2.f32 %v447_v14 }
 0x27f   : > { %v631_v15 = vpop.eup %630 }
 0x280   : > { %v633_v16 = vpop.eup %632  ;;  %v449_v17 = vmul.f32 0.6931472, %v631_v15 }
 0x281   : > { %v451_v18 = vmul.f32 0.6931472, %v633_v16 }
 0x282   : > { %v452_v21 = vadd.f32 %v449_v17, %v414_v51 }
 0x283   : > { %v453_v20 = vadd.f32 %v451_v18, %v421_v10 }
 0x285   : > { %v456_v22 = vrot.slane %v453_v20, 7 }
 0x287   : > { %v458_v23 = vsel %vm457_vm9, %v452_v21, %v456_v22 }
 0x288   : > { %464 = vst.msk [vmem:[%s163_s25] sm:$0x3] %vm462_vm10, %v458_v23 }
 0x289   : > { %661 = shalt.err (!%p658_p3)
}
 0x28a   : > { %562 = dma.vmem_to_hbm [thread:$0]  (%p759_p5), %s479_s26, 32, %s481_s27, %s466_s16  }
 0x28b PF: > { %p568_p4 = scmp.ge.s32.totalorder %s696_s15, 2  ;;  %s492_s8 = sand.u32 1, %s684_s12  }
 0x28c   : > { %s493_s9 = scalar_lea.sflag [#allocation3], %s492_s8 }
 0x28d   : > { %p565_p7 = pnand %p568_p4, %p763_p6 }
 0x28f   : > { %p566_p8 = pneg %p565_p7 }
 0x291   : > { %679 = dma.done.wait (%p566_p8), %s493_s9, 32  }
 0x292   : > { %681 = vsyncadd (%p566_p8), %s493_s9, 4294967264  ;;  %p13_p9 = scmp.ge.s32.totalorder %s746_s18, 4   ;;  %s852_s12 = smov %s688_s13 }
 0x293   : > { %s853_s13 = smov %s692_s14  ;;  %s854_s14 = smov %s757_s21 }
 0x294   : > { %s855_s15 = smov %s746_s18  ;;  %15 = sbr.rel (!%p13_p9) target bundleno = 3 (0x3), region = 67 }
 0x299   :  { %499 = vsyncpa [#allocation3], 1 }
 0x29a   :  { %501 = vsyncpa [#allocation3 + $0x1], 1 }

</bundles_post_ra>
